<compile_context>
chip_gen: v6e
topology: v6e:2x2x1
jax: 0.10.0
libtpu: 0.0.40
codegen_flags: <defaults>
</compile_context>

<pallas_src>
import numpy as np

import jax
import jax.numpy as jnp
from jax import lax
from jax.experimental import pallas as pl
from jax.experimental.pallas import tpu as pltpu

LANE = 128
SUBLANE = 8


def _round_up(x, m):
    return ((x + m - 1) // m) * m


def _default_act_dtype():
    """bf16 tanh on v6e/v7x (bf16 EUP), f32 elsewhere (v5e has no bf16 EUP/VPU)."""
    try:
        kind = jax.devices()[0].device_kind.lower()
    except Exception:
        return jnp.float32
    if "v6" in kind or "v7" in kind:
        return jnp.bfloat16
    return jnp.float32


# ------------------------------- kernel -------------------------------------

def _make_kernel(n_hidden, act_dtype, compute_dtype):
    use_fori = n_hidden >= 8  # keeps one layer's working set live for deep stacks

    def kernel(x_ref, w_in_ref, b_in_ref, w_h_ref, b_h_ref,
               w_eo_ref, b_eo_ref, w_di_ref, b_di_ref,
               w_do_ref, b_do_ref, o_ref):

        def layer(h, w, b, act):
            # bf16 MXU operands, f32 accumulate + bias; tanh in act_dtype.
            y = jnp.dot(h.astype(w.dtype), w,
                        preferred_element_type=jnp.float32) + b
            if act:
                y = jnp.tanh(y.astype(act_dtype))
            return y

        def hidden_body(li, carry):
            y = jnp.dot(carry, w_h_ref[li],
                        preferred_element_type=jnp.float32) + b_h_ref[li]
            return jnp.tanh(y.astype(act_dtype)).astype(compute_dtype)

        def hidden_chain(h):
            if n_hidden == 0:
                return h
            hh = h.astype(compute_dtype)
            if use_fori:
                return lax.fori_loop(0, n_hidden, hidden_body, hh)
            for li in range(n_hidden):          # static unroll for small stacks
                hh = hidden_body(li, hh)
            return hh

        h = x_ref[...]                                         # (TB, P_d) bf16
        h = layer(h, w_in_ref[...], b_in_ref[...], True)       # (TB, P_n)
        h = hidden_chain(h)                                    # shared hidden (enc)
        z = layer(h, w_eo_ref[...], b_eo_ref[...], False)      # bottleneck, no act
        h = layer(z, w_di_ref[...], b_di_ref[...], True)       # (TB, P_n)
        h = hidden_chain(h)                                    # shared hidden (dec)
        h = layer(h, w_do_ref[...], b_do_ref[...], True)       # tanh(0.5*x) == 2*sigmoid(x)-1
        o_ref[...] = h.astype(o_ref.dtype)

    return kernel


# ----------------------------- preparation ----------------------------------

def prepare_autoencoder(params, compute_dtype=jnp.bfloat16, act_dtype=None):
    """Pad to per-stage lane widths, stack the shared hidden layers, cast once."""
    if act_dtype is None:
        act_dtype = _default_act_dtype()

    w_in, b_in = params["enc_in"]
    hidden = params["hidden"]
    w_eo, b_eo = params["enc_out"]
    w_di, b_di = params["dec_in"]
    w_do, b_do = params["dec_out"]

    dim = w_in.shape[0]
    neurons = w_in.shape[1]
    dim_reduced = w_eo.shape[1]
    out_dim = w_do.shape[1]

    P_d = _round_up(max(dim, out_dim), LANE)   # input/output width
    P_n = _round_up(neurons, LANE)             # hidden width
    P_r = _round_up(dim_reduced, LANE)         # bottleneck width

    def pad_w(w, pi, po):
        return jnp.zeros((pi, po), jnp.float32).at[:w.shape[0], :w.shape[1]].set(w)

    def pad_b(b, po):
        return jnp.zeros((1, po), jnp.float32).at[0, :b.shape[0]].set(b)

    n_hidden = len(hidden)
    if n_hidden > 0:
        w_h = jnp.stack([pad_w(w, P_n, P_n) for w, _ in hidden])
        b_h = jnp.stack([pad_b(b, P_n) for _, b in hidden])
    else:  # dummy operand, never read (loop count 0)
        w_h = jnp.zeros((1, P_n, P_n), jnp.float32)
        b_h = jnp.zeros((1, 1, P_n), jnp.float32)

    return {
        "w_in": pad_w(w_in, P_d, P_n).astype(compute_dtype),
        "b_in": pad_b(b_in, P_n),
        "w_h": w_h.astype(compute_dtype),
        "b_h": b_h,
        "w_eo": pad_w(w_eo, P_n, P_r).astype(compute_dtype),
        "b_eo": pad_b(b_eo, P_r),
        "w_di": pad_w(w_di, P_r, P_n).astype(compute_dtype),
        "b_di": pad_b(b_di, P_n),
        # decoder output: 2*sigmoid(x)-1 == tanh(x/2) -> pre-scale W,b by 0.5
        "w_do": pad_w(0.5 * w_do, P_n, P_d).astype(compute_dtype),
        "b_do": pad_b(0.5 * b_do, P_d),
        "n_hidden": n_hidden,
        "act_dtype": act_dtype,
        "compute_dtype": compute_dtype,
        "P_d": P_d, "P_n": P_n, "P_r": P_r,
        "in_dim": dim, "out_dim": out_dim,
    }


# ------------------------------- wrapper ------------------------------------

def autoencoder_forward(x, prepared, block_batch=1024):
    """Full encode+decode forward pass in one Pallas kernel call. Returns bf16."""
    batch, in_dim = x.shape
    assert in_dim == prepared["in_dim"]
    P_d, P_n, P_r = prepared["P_d"], prepared["P_n"], prepared["P_r"]
    n_hidden = prepared["n_hidden"]
    nhb = max(n_hidden, 1)
    cd = prepared["compute_dtype"]
    cd_itemsize = np.dtype(cd).itemsize

    # Batch tile: multiple of SUBLANE, large by default, and split so the
    # "parallel" grid has >=2 steps (feeds both TensorCores on v7x).
    tb = min(_round_up(block_batch, SUBLANE), _round_up(batch, SUBLANE))
    if _round_up(batch, tb) // tb < 2 and tb > SUBLANE:
        tb = _round_up((batch + 1) // 2, SUBLANE)
    padded_batch = _round_up(batch, tb)
    grid = (padded_batch // tb,)

    # Pad + cast input once, directly in bf16 (lane-dense, unmasked loads).
    x_pad = jnp.zeros((padded_batch, P_d), cd).at[:batch, :in_dim].set(x.astype(cd))

    const2 = lambda i: (0, 0)
    const3 = lambda i: (0, 0, 0)
    in_specs = [
        pl.BlockSpec((tb, P_d), lambda i: (i, 0)),            # x: tiled over batch
        pl.BlockSpec((P_d, P_n), const2),                     # enc_in  W (resident)
        pl.BlockSpec((1, P_n), const2),                       # enc_in  b
        pl.BlockSpec((nhb, P_n, P_n), const3),                # shared hidden W stack
        pl.BlockSpec((nhb, 1, P_n), const3),                  # shared hidden b stack
        pl.BlockSpec((P_n, P_r), const2),                     # enc_out W
        pl.BlockSpec((1, P_r), const2),                       # enc_out b
        pl.BlockSpec((P_r, P_n), const2),                     # dec_in  W
        pl.BlockSpec((1, P_n), const2),                       # dec_in  b
        pl.BlockSpec((P_n, P_d), const2),                     # dec_out W (0.5-scaled)
        pl.BlockSpec((1, P_d), const2),                       # dec_out b (0.5-scaled)
    ]

    # VMEM budget: 2x (pipelining) on every operand + activation working set,
    # floored at 32 MiB (v5e default scoped is only 16), capped below v7x's 64.
    weight_keys = ("w_in", "b_in", "w_h", "b_h", "w_eo", "b_eo",
                   "w_di", "b_di", "w_do", "b_do")
    weight_bytes = sum(int(prepared[k].size) * prepared[k].dtype.itemsize
                       for k in weight_keys)
    io_bytes = 2 * 2 * tb * P_d * cd_itemsize                 # x + out blocks, 2-buffered
    act_bytes = 6 * tb * max(P_d, P_n, P_r) * 4               # f32 working-set headroom
    vmem_limit = int(min(max(2 * weight_bytes + io_bytes + act_bytes + (8 << 20),
                             32 << 20), 56 << 20))

    out = pl.pallas_call(
        _make_kernel(n_hidden, prepared["act_dtype"], cd),
        out_shape=jax.ShapeDtypeStruct((padded_batch, P_d), cd),   # bf16, lane-dense
        grid=grid,
        in_specs=in_specs,
        out_specs=pl.BlockSpec((tb, P_d), lambda i: (i, 0)),
        compiler_params=pltpu.CompilerParams(
            dimension_semantics=("parallel",),                     # shard batch across TCs
            vmem_limit_bytes=vmem_limit,
        ),
    )(x_pad, *(prepared[k] for k in weight_keys))
    return out[:batch, :prepared["out_dim"]]


# ----------------------------- references -----------------------------------

def _ref_forward_f32(x, params):
    """Pure-f32 JAX reference mirroring the PyTorch forward exactly."""
    h = x
    w, b = params["enc_in"]
    h = jnp.tanh(h @ w + b)
    for w, b in params["hidden"]:
        h = jnp.tanh(h @ w + b)
    w, b = params["enc_out"]
    z = h @ w + b
    w, b = params["dec_in"]
    h = jnp.tanh(z @ w + b)
    for w, b in params["hidden"]:
        h = jnp.tanh(h @ w + b)
    w, b = params["dec_out"]
    return 2.0 * jax.nn.sigmoid(h @ w + b) - 1.0


def _ref_forward_prepared(x, prepared):
    """Pure-JAX mirror of the exact kernel math (padded, bf16 operands, f32 accum)."""
    cd = prepared["compute_dtype"]
    ad = prepared["act_dtype"]
    batch, in_dim = x.shape
    h = jnp.zeros((batch, prepared["P_d"]), cd).at[:, :in_dim].set(x.astype(cd))

    def lay(h, w, b, act):
        y = jnp.dot(h.astype(w.dtype), w, preferred_element_type=jnp.float32) + b
        return jnp.tanh(y.astype(ad)) if act else y

    def hidden_chain(h):
        hh = h.astype(cd)
        for li in range(prepared["n_hidden"]):
            hh = lay(hh, prepared["w_h"][li], prepared["b_h"][li], True).astype(cd)
        return hh

    h = lay(h, prepared["w_in"], prepared["b_in"], True)
    h = hidden_chain(h)
    z = lay(h, prepared["w_eo"], prepared["b_eo"], False)
    h = lay(z, prepared["w_di"], prepared["b_di"], True)
    h = hidden_chain(h)
    h = lay(h, prepared["w_do"], prepared["b_do"], True)
    return h[:, :prepared["out_dim"]].astype(cd).astype(jnp.float32)


def init_params(key, layers_AE, neurons_AE, dim, dim_reduced):
    """Deterministic synthetic parameters (PyTorch-Linear-like uniform init)."""
    def linear(key, fan_in, fan_out):
        k1, k2 = jax.random.split(key)
        bound = 1.0 / jnp.sqrt(fan_in)
        w = jax.random.uniform(k1, (fan_in, fan_out), jnp.float32, -bound, bound)
        b = jax.random.uniform(k2, (fan_out,), jnp.float32, -bound, bound)
        return w, b

    keys = jax.random.split(key, 4 + (layers_AE - 1))
    return {
        "enc_in": linear(keys[0], dim, neurons_AE),
        "hidden": [linear(keys[4 + i], neurons_AE, neurons_AE)
                   for i in range(layers_AE - 1)],
        "enc_out": linear(keys[1], neurons_AE, dim_reduced),
        "dec_in": linear(keys[2], dim_reduced, neurons_AE),
        "dec_out": linear(keys[3], neurons_AE, dim),
    }


if __name__ == "__main__":
    # Small, module-consistent configuration (activation = torch.nn.Tanh()).
    layers_AE = 2       # -> one shared hidden Linear(neurons, neurons)
    neurons_AE = 32
    dim = 16
    dim_reduced = 8
    batch = 64

    key = jax.random.PRNGKey(0)
    k_params, k_x = jax.random.split(key)
    params = init_params(k_params, layers_AE, neurons_AE, dim, dim_reduced)
    x = jax.random.normal(k_x, (batch, dim), jnp.float32)

    # Pad / stack / cast parameters once; reused for every forward call.
    prepared = prepare_autoencoder(params)

    # Default block_batch is large; at batch=64 the wrapper splits the tile so
    # the parallel grid still has 2 steps (both TensorCores on v7x).
    out = autoencoder_forward(x, prepared)
    out = jax.block_until_ready(out)
    assert out.shape == (batch, dim), out.shape
    out_f32 = out.astype(jnp.float32)

    # Tight check vs a pure-JAX mirror of the exact kernel math (bf16 I/O + operands).
    ref_mirror = _ref_forward_prepared(x, prepared)
    err_kernel = float(jnp.max(jnp.abs(out_f32 - ref_mirror)))
    assert err_kernel < 1e-2, err_kernel

    # Loose check vs the f32 PyTorch-equivalent forward (bf16 rounding throughout).
    ref_f32 = _ref_forward_f32(x, params)
    err_f32 = float(jnp.max(jnp.abs(out_f32 - ref_f32)))
    assert err_f32 < 5e-2, err_f32

    print("KERNEL_OK")
</pallas_src>

<mosaic_0001>
module attributes {stable_mosaic.version = 11 : i64} {
  func.func @kernel(%arg0: i32, %arg1: memref<32x128xbf16, #tpu.memory_space<vmem>>, %arg2: memref<128x128xbf16, #tpu.memory_space<vmem>>, %arg3: memref<1x128xf32, #tpu.memory_space<vmem>>, %arg4: memref<1x128x128xbf16, #tpu.memory_space<vmem>>, %arg5: memref<1x1x128xf32, #tpu.memory_space<vmem>>, %arg6: memref<128x128xbf16, #tpu.memory_space<vmem>>, %arg7: memref<1x128xf32, #tpu.memory_space<vmem>>, %arg8: memref<128x128xbf16, #tpu.memory_space<vmem>>, %arg9: memref<1x128xf32, #tpu.memory_space<vmem>>, %arg10: memref<128x128xbf16, #tpu.memory_space<vmem>>, %arg11: memref<1x128xf32, #tpu.memory_space<vmem>>, %arg12: memref<32x128xbf16, #tpu.memory_space<vmem>>) attributes {dimension_semantics = [#tpu.dimension_semantics<parallel>], iteration_bounds = array<i64: 2>, scalar_prefetch = 0 : i64, scratch_operands = 0 : i64, tpu.core_type = #tpu.core_type<tc>, window_params = [{transform_indices = @transform_0, window_bounds = array<i64: 32, 128>}, {pipeline_mode = #tpu.pipeline_mode<synchronous>, transform_indices = @transform_1, window_bounds = array<i64: 128, 128>}, {pipeline_mode = #tpu.pipeline_mode<synchronous>, transform_indices = @transform_2, window_bounds = array<i64: 1, 128>}, {pipeline_mode = #tpu.pipeline_mode<synchronous>, transform_indices = @transform_3, window_bounds = array<i64: 1, 128, 128>}, {pipeline_mode = #tpu.pipeline_mode<synchronous>, transform_indices = @transform_4, window_bounds = array<i64: 1, 1, 128>}, {pipeline_mode = #tpu.pipeline_mode<synchronous>, transform_indices = @transform_5, window_bounds = array<i64: 128, 128>}, {pipeline_mode = #tpu.pipeline_mode<synchronous>, transform_indices = @transform_6, window_bounds = array<i64: 1, 128>}, {pipeline_mode = #tpu.pipeline_mode<synchronous>, transform_indices = @transform_7, window_bounds = array<i64: 128, 128>}, {pipeline_mode = #tpu.pipeline_mode<synchronous>, transform_indices = @transform_8, window_bounds = array<i64: 1, 128>}, {pipeline_mode = #tpu.pipeline_mode<synchronous>, transform_indices = @transform_9, window_bounds = array<i64: 128, 128>}, {pipeline_mode = #tpu.pipeline_mode<synchronous>, transform_indices = @transform_10, window_bounds = array<i64: 1, 128>}, {transform_indices = @transform_11, window_bounds = array<i64: 32, 128>}]} {
    %c0 = arith.constant 0 : index
    %c0_0 = arith.constant 0 : index
    %0 = vector.load %arg1[%c0, %c0_0] : memref<32x128xbf16, #tpu.memory_space<vmem>>, vector<32x128xbf16>
    %c0_1 = arith.constant 0 : index
    %c0_2 = arith.constant 0 : index
    %1 = vector.load %arg2[%c0_1, %c0_2] : memref<128x128xbf16, #tpu.memory_space<vmem>>, vector<128x128xbf16>
    %c0_3 = arith.constant 0 : index
    %c0_4 = arith.constant 0 : index
    %2 = vector.load %arg3[%c0_3, %c0_4] : memref<1x128xf32, #tpu.memory_space<vmem>>, vector<1x128xf32>
    %cst = arith.constant dense<0.000000e+00> : vector<32x128xf32>
    %3 = tpu.matmul %0, %1, %cst {dimension_numbers = #tpu.dot_dimension_numbers<[1], [0], [0], [1], [0, 0, 1, 1], [], []>} : vector<32x128xbf16>, vector<128x128xbf16>, vector<32x128xf32> -> vector<32x128xf32>
    %4 = vector.broadcast %2 : vector<1x128xf32> to vector<32x128xf32>
    %5 = arith.addf %3, %4 : vector<32x128xf32>
    %6 = math.tanh %5 : vector<32x128xf32>
    %7 = arith.truncf %6 : vector<32x128xf32> to vector<32x128xbf16>
    %c0_5 = arith.constant 0 : index
    %c0_6 = arith.constant 0 : index
    %c0_7 = arith.constant 0 : index
    %8 = vector.load %arg4[%c0_5, %c0_6, %c0_7] : memref<1x128x128xbf16, #tpu.memory_space<vmem>>, vector<1x128x128xbf16>
    %9 = vector.shape_cast %8 : vector<1x128x128xbf16> to vector<128x128xbf16>
    %cst_8 = arith.constant dense<0.000000e+00> : vector<32x128xf32>
    %10 = tpu.matmul %7, %9, %cst_8 {dimension_numbers = #tpu.dot_dimension_numbers<[1], [0], [0], [1], [0, 0, 1, 1], [], []>} : vector<32x128xbf16>, vector<128x128xbf16>, vector<32x128xf32> -> vector<32x128xf32>
    %c0_9 = arith.constant 0 : index
    %c0_10 = arith.constant 0 : index
    %c0_11 = arith.constant 0 : index
    %11 = vector.load %arg5[%c0_9, %c0_10, %c0_11] : memref<1x1x128xf32, #tpu.memory_space<vmem>>, vector<1x1x128xf32>
    %12 = vector.shape_cast %11 : vector<1x1x128xf32> to vector<1x128xf32>
    %13 = vector.broadcast %12 : vector<1x128xf32> to vector<32x128xf32>
    %14 = arith.addf %10, %13 : vector<32x128xf32>
    %15 = math.tanh %14 : vector<32x128xf32>
    %16 = arith.truncf %15 : vector<32x128xf32> to vector<32x128xbf16>
    %c0_12 = arith.constant 0 : index
    %c0_13 = arith.constant 0 : index
    %17 = vector.load %arg6[%c0_12, %c0_13] : memref<128x128xbf16, #tpu.memory_space<vmem>>, vector<128x128xbf16>
    %c0_14 = arith.constant 0 : index
    %c0_15 = arith.constant 0 : index
    %18 = vector.load %arg7[%c0_14, %c0_15] : memref<1x128xf32, #tpu.memory_space<vmem>>, vector<1x128xf32>
    %cst_16 = arith.constant dense<0.000000e+00> : vector<32x128xf32>
    %19 = tpu.matmul %16, %17, %cst_16 {dimension_numbers = #tpu.dot_dimension_numbers<[1], [0], [0], [1], [0, 0, 1, 1], [], []>} : vector<32x128xbf16>, vector<128x128xbf16>, vector<32x128xf32> -> vector<32x128xf32>
    %20 = vector.broadcast %18 : vector<1x128xf32> to vector<32x128xf32>
    %21 = arith.addf %19, %20 : vector<32x128xf32>
    %c0_17 = arith.constant 0 : index
    %c0_18 = arith.constant 0 : index
    %22 = vector.load %arg8[%c0_17, %c0_18] : memref<128x128xbf16, #tpu.memory_space<vmem>>, vector<128x128xbf16>
    %c0_19 = arith.constant 0 : index
    %c0_20 = arith.constant 0 : index
    %23 = vector.load %arg9[%c0_19, %c0_20] : memref<1x128xf32, #tpu.memory_space<vmem>>, vector<1x128xf32>
    %24 = arith.truncf %21 : vector<32x128xf32> to vector<32x128xbf16>
    %cst_21 = arith.constant dense<0.000000e+00> : vector<32x128xf32>
    %25 = tpu.matmul %24, %22, %cst_21 {dimension_numbers = #tpu.dot_dimension_numbers<[1], [0], [0], [1], [0, 0, 1, 1], [], []>} : vector<32x128xbf16>, vector<128x128xbf16>, vector<32x128xf32> -> vector<32x128xf32>
    %26 = vector.broadcast %23 : vector<1x128xf32> to vector<32x128xf32>
    %27 = arith.addf %25, %26 : vector<32x128xf32>
    %28 = math.tanh %27 : vector<32x128xf32>
    %29 = arith.truncf %28 : vector<32x128xf32> to vector<32x128xbf16>
    %c0_22 = arith.constant 0 : index
    %c0_23 = arith.constant 0 : index
    %c0_24 = arith.constant 0 : index
    %30 = vector.load %arg4[%c0_22, %c0_23, %c0_24] : memref<1x128x128xbf16, #tpu.memory_space<vmem>>, vector<1x128x128xbf16>
    %31 = vector.shape_cast %30 : vector<1x128x128xbf16> to vector<128x128xbf16>
    %cst_25 = arith.constant dense<0.000000e+00> : vector<32x128xf32>
    %32 = tpu.matmul %29, %31, %cst_25 {dimension_numbers = #tpu.dot_dimension_numbers<[1], [0], [0], [1], [0, 0, 1, 1], [], []>} : vector<32x128xbf16>, vector<128x128xbf16>, vector<32x128xf32> -> vector<32x128xf32>
    %c0_26 = arith.constant 0 : index
    %c0_27 = arith.constant 0 : index
    %c0_28 = arith.constant 0 : index
    %33 = vector.load %arg5[%c0_26, %c0_27, %c0_28] : memref<1x1x128xf32, #tpu.memory_space<vmem>>, vector<1x1x128xf32>
    %34 = vector.shape_cast %33 : vector<1x1x128xf32> to vector<1x128xf32>
    %35 = vector.broadcast %34 : vector<1x128xf32> to vector<32x128xf32>
    %36 = arith.addf %32, %35 : vector<32x128xf32>
    %37 = math.tanh %36 : vector<32x128xf32>
    %38 = arith.truncf %37 : vector<32x128xf32> to vector<32x128xbf16>
    %c0_29 = arith.constant 0 : index
    %c0_30 = arith.constant 0 : index
    %39 = vector.load %arg10[%c0_29, %c0_30] : memref<128x128xbf16, #tpu.memory_space<vmem>>, vector<128x128xbf16>
    %c0_31 = arith.constant 0 : index
    %c0_32 = arith.constant 0 : index
    %40 = vector.load %arg11[%c0_31, %c0_32] : memref<1x128xf32, #tpu.memory_space<vmem>>, vector<1x128xf32>
    %cst_33 = arith.constant dense<0.000000e+00> : vector<32x128xf32>
    %41 = tpu.matmul %38, %39, %cst_33 {dimension_numbers = #tpu.dot_dimension_numbers<[1], [0], [0], [1], [0, 0, 1, 1], [], []>} : vector<32x128xbf16>, vector<128x128xbf16>, vector<32x128xf32> -> vector<32x128xf32>
    %42 = vector.broadcast %40 : vector<1x128xf32> to vector<32x128xf32>
    %43 = arith.addf %41, %42 : vector<32x128xf32>
    %44 = math.tanh %43 : vector<32x128xf32>
    %45 = arith.truncf %44 : vector<32x128xf32> to vector<32x128xbf16>
    %c0_34 = arith.constant 0 : index
    %c0_35 = arith.constant 0 : index
    %46 = vector.load %arg12[%c0_34, %c0_35] : memref<32x128xbf16, #tpu.memory_space<vmem>>, vector<32x128xbf16>
    tpu.vector_store %arg12[%c0_34, %c0_35], %45 {strides = array<i32>} : memref<32x128xbf16, #tpu.memory_space<vmem>>, vector<32x128xbf16>,
    return
  }
  func.func @transform_0(%arg0: i32) -> (i32, i32) {
    %c0_i32 = arith.constant 0 : i32
    %c0_i32_0 = arith.constant 0 : i32
    return %arg0, %c0_i32 : i32, i32
  }
  func.func @transform_1(%arg0: i32) -> (i32, i32) {
    %c0_i32 = arith.constant 0 : i32
    %c0_i32_0 = arith.constant 0 : i32
    %c0_i32_1 = arith.constant 0 : i32
    return %c0_i32, %c0_i32_0 : i32, i32
  }
  func.func @transform_2(%arg0: i32) -> (i32, i32) {
    %c0_i32 = arith.constant 0 : i32
    %c0_i32_0 = arith.constant 0 : i32
    %c0_i32_1 = arith.constant 0 : i32
    return %c0_i32, %c0_i32_0 : i32, i32
  }
  func.func @transform_3(%arg0: i32) -> (i32, i32, i32) {
    %c0_i32 = arith.constant 0 : i32
    %c0_i32_0 = arith.constant 0 : i32
    %c0_i32_1 = arith.constant 0 : i32
    %c0_i32_2 = arith.constant 0 : i32
    return %c0_i32, %c0_i32_0, %c0_i32_1 : i32, i32, i32
  }
  func.func @transform_4(%arg0: i32) -> (i32, i32, i32) {
    %c0_i32 = arith.constant 0 : i32
    %c0_i32_0 = arith.constant 0 : i32
    %c0_i32_1 = arith.constant 0 : i32
    %c0_i32_2 = arith.constant 0 : i32
    return %c0_i32, %c0_i32_0, %c0_i32_1 : i32, i32, i32
  }
  func.func @transform_5(%arg0: i32) -> (i32, i32) {
    %c0_i32 = arith.constant 0 : i32
    %c0_i32_0 = arith.constant 0 : i32
    %c0_i32_1 = arith.constant 0 : i32
    return %c0_i32, %c0_i32_0 : i32, i32
  }
  func.func @transform_6(%arg0: i32) -> (i32, i32) {
    %c0_i32 = arith.constant 0 : i32
    %c0_i32_0 = arith.constant 0 : i32
    %c0_i32_1 = arith.constant 0 : i32
    return %c0_i32, %c0_i32_0 : i32, i32
  }
  func.func @transform_7(%arg0: i32) -> (i32, i32) {
    %c0_i32 = arith.constant 0 : i32
    %c0_i32_0 = arith.constant 0 : i32
    %c0_i32_1 = arith.constant 0 : i32
    return %c0_i32, %c0_i32_0 : i32, i32
  }
  func.func @transform_8(%arg0: i32) -> (i32, i32) {
    %c0_i32 = arith.constant 0 : i32
    %c0_i32_0 = arith.constant 0 : i32
    %c0_i32_1 = arith.constant 0 : i32
    return %c0_i32, %c0_i32_0 : i32, i32
  }
  func.func @transform_9(%arg0: i32) -> (i32, i32) {
    %c0_i32 = arith.constant 0 : i32
    %c0_i32_0 = arith.constant 0 : i32
    %c0_i32_1 = arith.constant 0 : i32
    return %c0_i32, %c0_i32_0 : i32, i32
  }
  func.func @transform_10(%arg0: i32) -> (i32, i32) {
    %c0_i32 = arith.constant 0 : i32
    %c0_i32_0 = arith.constant 0 : i32
    %c0_i32_1 = arith.constant 0 : i32
    return %c0_i32, %c0_i32_0 : i32, i32
  }
  func.func @transform_11(%arg0: i32) -> (i32, i32) {
    %c0_i32 = arith.constant 0 : i32
    %c0_i32_0 = arith.constant 0 : i32
    return %arg0, %c0_i32 : i32, i32
  }
}

</mosaic_0001>

<bundles_post_ra>
// kernel: tpu_custom_call.1
= control target key start
LH: loop header
LB: loop body
LE: loop exit
PB: predicated region body
PF: predicated region fallthrough
CT: control target
= control target key end

     0   :  { %s2423_s0 = inlined_call_operand.hbm [shape: bf16[64,128], index: 0, kind: input, shape index: {}]   ;;  %s2424_s1 = inlined_call_operand.hbm [shape: bf16[128,128], index: 1, kind: input, shape index: {}]   ;;  %s2425_s2 = inlined_call_operand.vmem [shape: f32[1,128], index: 2, kind: input, shape index: {}]   ;;  %s2426_s3 = inlined_call_operand.hbm [shape: bf16[1,128,128], index: 3, kind: input, shape index: {}]   ;;  %s2427_s4 = inlined_call_operand.vmem [shape: f32[1,1,128], index: 4, kind: input, shape index: {}]   ;;  %s2428_s5 = inlined_call_operand.hbm [shape: bf16[128,128], index: 5, kind: input, shape index: {}]   ;;  %s2429_s6 = inlined_call_operand.vmem [shape: f32[1,128], index: 6, kind: input, shape index: {}]   ;;  %s2430_s7 = inlined_call_operand.hbm [shape: bf16[128,128], index: 7, kind: input, shape index: {}]   ;;  %s2431_s8 = inlined_call_operand.vmem [shape: f32[1,128], index: 8, kind: input, shape index: {}]   ;;  %s2432_s9 = inlined_call_operand.hbm [shape: bf16[128,128], index: 9, kind: input, shape index: {}]   ;;  %s2433_s10 = inlined_call_operand.vmem [shape: f32[1,128], index: 10, kind: input, shape index: {}]   ;;  %s2434_s11 = inlined_call_operand.hbm [shape: bf16[64,128], index: 11, kind: output, shape index: {}]  }
   0x1   :  { %2441 = sst [smem:[#allocation19_spill]] %s2424_s1 }
   0x2   :  { %2442 = sst [smem:[#allocation20_spill]] %s2426_s3 }
   0x3   :  { %2443 = sst [smem:[#allocation21_spill]] %s2428_s5 }
   0x4   :  { %2444 = sst [smem:[#allocation22_spill]] %s2430_s7 }
   0x5   :  { %2445 = sst [smem:[#allocation23_spill]] %s2432_s9 }
   0x6   :  { %16 = vsyncpa [#allocation3], 0 }
   0x7   :  { %18 = vsyncpa [#allocation3 + $0x1], 0 }
   0x8   :  { %19 = vsyncpa [#allocation6], 0 }
   0x9   :  { %20 = vsyncpa [#allocation9], 0 }
   0xa   :  { %21 = vsyncpa [#allocation12], 0 }
   0xb   :  { %22 = vsyncpa [#allocation4], 0 }
   0xc   :  { %24 = vsyncpa [#allocation4 + $0x1], 0  ;;  %s2093_s17 = smov 0   ;;  %s2095_s18 = smov 0  }
   0xd   :  { %s2097_s19 = smov 0   ;;  %s2099_s20 = smov 0  }
   0xe LB: > { %s2022_s21 = smov [#allocation5]   ;;  %s2114_s23 = sadd.s32 4294967295, %s2020_s20   ;;  %s2020_s20 = sphi %s2099_s20, %s2474_s20   ;;  %s2016_s19 = sphi %s2097_s19, %s2473_s19   ;;  %s2012_s18 = sphi %s2095_s18, %s2472_s18   ;;  %s2008_s17 = sphi %s2093_s17, %s2471_s17  }
   0xf   : > { %s309_s22 = sshll.u32 %s2022_s21, 4  ;;  %p1332_p0 = scmp.ge.s32.totalorder %s2020_s20, 1  ;;  %s310_s22 = int_to_ptr.vmem [resolvable:$true] %s309_s22 }
  0x10   : > { %p2437_p1 = scmp.eq.s32.totalorder %s2114_s23, 0  ;;  %p297_p2 = scmp.lt.s32.totalorder %s2020_s20, 3 }
  0x11   : > { %s2023_s25 = smov [#allocation8]   ;;  %s2024_s28 = smov [#allocation7]  }
  0x12   : > { %p2119_p3 = pnand %p1332_p0, %p297_p2  ;;  %s341_s26 = sshll.u32 %s2023_s25, 4  ;;  %s2132_s26 = int_to_ptr.vmem [resolvable:$true] %s341_s26 }
  0x13   : > { %s325_s29 = sshll.u32 %s2024_s28, 4  ;;  %s1797_s12 = scalar_lea.vmem %s310_s22, 1024  ;;  %s2134_s29 = int_to_ptr.vmem [resolvable:$true] %s325_s29 }
  0x14   : > { %s2446_s24 = scalar_select %p2119_p3, 1, 0 }
  0x15   : > { %p1627_p5 = pneg %p2119_p3  ;;  %p1798_p8 = scmp.ne.s32.totalorder %s310_s22, %s1797_s12 }
  0x16   : > { %p1805_p11 = scmp.lt.s32.totalorder %s310_s22, %s310_s22  ;;  %p1806_p12 = scmp.lt.s32.totalorder %s1797_s12, %s1797_s12 }
  0x17   : > { %p2128_p6 = pnand %p1627_p5, %p2437_p1 }
  0x18   : > { %p1807_p13 = por %p1806_p12, %p1805_p11 }
  0x19   : > { %p2138_p7 = pneg %p2128_p6 }
  0x1b   : > { %p1800_p9 = pnand %p1798_p8, %p2138_p7 }
  0x1d   : > { %p1801_p10 = pneg %p1800_p9 }
  0x1f   : > { %p1808_p0 = pnand %p1807_p13, %p1801_p10 }
  0x21   : > { %1811 = shalt.err (!%p1808_p0)
}
  0x22   : > { %s2435_s13 = smov 64   ;;  %s2436_s14 = smov 4  }
  0x23   : > { %s2449_s1 = sld [smem:[#allocation19_spill]]  ;;  %s1823_s21 = scalar_lea.vmem %s2132_s26, 1024 }
  0x24   : > { %p1824_p2 = scmp.ne.s32.totalorder %s2132_s26, %s1823_s21  ;;  %p1831_p9 = scmp.lt.s32.totalorder %s2132_s26, %s2132_s26 }
  0x25   : > { %p1832_p10 = scmp.lt.s32.totalorder %s1823_s21, %s1823_s21 }
  0x26   : > { %p1826_p5 = pnand %p1824_p2, %p2138_p7 }
  0x27   : > { %p1833_p11 = por %p1832_p10, %p1831_p9 }
  0x28   : > { %p1827_p8 = pneg %p1826_p5 }
  0x29   : > { %1630 = dma.hbm_to_vmem [thread:$0]  (!%p2128_p6), %s2449_s1, 1024, %s310_s22, [#allocation6], %s2435_s13, %s2435_s13, %s2436_s14  }
  0x2a   : > { %p1834_p12 = pnand %p1833_p11, %p1827_p8 }
  0x2c   : > { %1837 = shalt.err (!%p1834_p12)
}
  0x2d   : > { %s2450_s5 = sld [smem:[#allocation21_spill]]  ;;  %s1849_s22 = scalar_lea.vmem %s2134_s29, 1024 }
  0x2e   : > { %p1850_p13 = scmp.ne.s32.totalorder %s2134_s29, %s1849_s22  ;;  %p1857_p5 = scmp.lt.s32.totalorder %s2134_s29, %s2134_s29 }
  0x2f   : > { %p1858_p8 = scmp.lt.s32.totalorder %s1849_s22, %s1849_s22 }
  0x30   : > { %p1852_p0 = pnand %p1850_p13, %p2138_p7 }
  0x31   : > { %p1859_p9 = por %p1858_p8, %p1857_p5 }
  0x32   : > { %p1853_p2 = pneg %p1852_p0 }
  0x33   : > { %1636 = dma.hbm_to_vmem [thread:$0]  (!%p2128_p6), %s2450_s5, 1024, %s2132_s26, [#allocation9], %s2435_s13, %s2435_s13, %s2436_s14  }
  0x34   : > { %p1860_p10 = pnand %p1859_p9, %p1853_p2 }
  0x36   : > { %1863 = shalt.err (!%p1860_p10)
}
  0x37   : > { %s2451_s3 = sld [smem:[#allocation20_spill]]  ;;  %s2027_s26 = smov [#allocation10]  }
  0x38   : > { %s357_s16 = sshll.u32 %s2027_s26, 4  ;;  %s2028_s21 = smov [#allocation11]   ;;  %s358_s16 = int_to_ptr.vmem [resolvable:$true] %s357_s16 }
  0x39   : > { %s373_s25 = sshll.u32 %s2028_s21, 4  ;;  %s1875_s28 = scalar_lea.vmem %s358_s16, 1024  ;;  %s374_s25 = int_to_ptr.vmem [resolvable:$true] %s373_s25 }
  0x3a   : > { %p1876_p11 = scmp.ne.s32.totalorder %s358_s16, %s1875_s28  ;;  %p1883_p0 = scmp.lt.s32.totalorder %s358_s16, %s358_s16 }
  0x3b   : > { %p1884_p2 = scmp.lt.s32.totalorder %s1875_s28, %s1875_s28 }
  0x3c   : > { %p1878_p12 = pnand %p1876_p11, %p2138_p7 }
  0x3d   : > { %1633 = dma.hbm_to_vmem [thread:$0]  (!%p2128_p6), %s2451_s3, 1024, %s2134_s29, [#allocation6], %s2435_s13, %s2435_s13, %s2436_s14  }
  0x3e   : > { %p1879_p13 = pneg %p1878_p12  ;;  %p1885_p5 = por %p1884_p2, %p1883_p0 }
  0x40   : > { %p1886_p8 = pnand %p1885_p5, %p1879_p13 }
  0x42   : > { %1889 = shalt.err (!%p1886_p8)
}
  0x43   : > { %s2452_s7 = sld [smem:[#allocation22_spill]]  ;;  %s1901_s12 = scalar_lea.vmem %s374_s25, 1024 }
  0x44   : > { %p1902_p9 = scmp.ne.s32.totalorder %s374_s25, %s1901_s12  ;;  %p1909_p12 = scmp.lt.s32.totalorder %s374_s25, %s374_s25 }
  0x45   : > { %p1910_p0 = scmp.lt.s32.totalorder %s1901_s12, %s1901_s12 }
  0x46   : > { %p1904_p10 = pnand %p1902_p9, %p2138_p7 }
  0x47   : > { %p1911_p13 = por %p1910_p0, %p1909_p12 }
  0x48   : > { %p1905_p11 = pneg %p1904_p10 }
  0x49   : > { %1639 = dma.hbm_to_vmem [thread:$0]  (!%p2128_p6), %s2452_s7, 1024, %s358_s16, [#allocation9], %s2435_s13, %s2435_s13, %s2436_s14  }
  0x4a   : > { %p1912_p2 = pnand %p1911_p13, %p1905_p11 }
  0x4c   : > { %1915 = shalt.err (!%p1912_p2)
}
  0x4d   : > { %s2453_s9 = sld [smem:[#allocation23_spill]]  ;;  %s1331_s27 = sadd.s32 4294967294, %s2020_s20  }
  0x4e   : > { %s2204_s30 = sadd.s32 1, %s2020_s20   ;;  %s37_s16 = sadd.s32 1, %s2016_s19 }
  0x4f   : > { %s34_s21 = ssub.s32 %s2020_s20, %s2204_s30  ;;  %p44_p7 = scmp.ne.s32.totalorder %s2016_s19, %s2012_s18 }
  0x50   : > { %p35_p5 = scmp.eq.s32.totalorder %s34_s21, 0  ;;  %p45_p8 = scmp.eq.s32.totalorder %s2020_s20, 0 }
  0x51   : > { %p50_p9 = scmp.ne.s32.totalorder %s2012_s18, %s2008_s17  ;;  %p284_p10 = scmp.eq.s32.totalorder %s2114_s23, 1 }
  0x52   : > { %s2216_s28 = scalar_select %p35_p5, %s2016_s19, %s37_s16  }
  0x53   : > { %1642 = dma.hbm_to_vmem [thread:$0]  (!%p2128_p6), %s2453_s9, 1024, %s374_s25, [#allocation12], %s2435_s13, %s2435_s13, %s2436_s14  }
  0x54   : > { %p46_p11 = por %p45_p8, %p44_p7  ;;  %p2220_p12 = por %p2437_p1, %p50_p9 }
  0x55   : > { %p2224_p6 = por %p284_p10, %p44_p7  ;;  %p290_p0 = scmp.eq.s32.totalorder %s1331_s27, 1 }
  0x56   : > { %s2454_s29 = scalar_select %p2220_p12, 1, 0 }
  0x57   : > { %s2455_s25 = scalar_select %p2224_p6, 1, 0 }
  0x58   : > { %p1656_p13 = scmp.lt.s32.totalorder %s2020_s20, 2  ;;  %s390_s22 = sand.u32 1, %s2016_s19  }
  0x59   : > { %p2230_p2 = por %p290_p0, %p50_p9  ;;  %s1339_s15 = sshll.u32 %s390_s22, 4 }
  0x5a   : > { %s1406_s26 = sshll.u32 %s2020_s20, 8  ;;  %s394_s14 = scalar_lea.vmem [#allocation2], %s1339_s15 }
  0x5b   : > { %s2456_s12 = scalar_select %p2230_p2, 1, 0 }
  0x5c   : > { %s2238_s13 = scalar_lea.hbm %s2423_s0, %s1406_s26  ;;  %s401_s1 = sshll.u32 %s394_s14, 4  ;;  %s2244_s1 = int_to_ptr.vmem [resolvable:$true] %s401_s1 }
  0x5d   : > { %p2240_p7 = pnand %p1656_p13, %p46_p11  ;;  %s2246_s3 = scalar_lea.sflag [#allocation3], %s390_s22 }
  0x5e   : > { %s1916_s5 = scalar_lea.hbm %s2238_s13, 256  ;;  %s1921_s15 = scalar_lea.hbm %s2423_s0, 512 }
  0x5f   : > { %p1917_p5 = scmp.ne.s32.totalorder %s2238_s13, %s1916_s5  ;;  %p1918_p8 = pneg %p2240_p7 }
  0x60   : > { %p1922_p11 = scmp.lt.s32.totalorder %s2238_s13, %s2423_s0  ;;  %p1923_p0 = scmp.lt.s32.totalorder %s1921_s15, %s1916_s5 }
  0x61   : > { %p1919_p9 = pnand %p1918_p8, %p1917_p5 }
  0x62   : > { %p1924_p13 = por %p1923_p0, %p1922_p11 }
  0x63   : > { %p1920_p10 = pneg %p1919_p9 }
  0x65   : > { %p1925_p4 = pnand %p1924_p13, %p1920_p10 }
  0x67   : > { %1928 = shalt.err (!%p1925_p4)
}
  0x68   : > { %s1929_s22 = scalar_lea.vmem %s2244_s1, 256  ;;  %s2029_s7 = smov [#allocation2]  }
  0x69   : > { %p1930_p1 = scmp.ne.s32.totalorder %s2244_s1, %s1929_s22  ;;  %s1934_s9 = sshll.u32 %s2029_s7, 4  ;;  %s1935_s9 = int_to_ptr.vmem [resolvable:$false] %s1934_s9 }
  0x6a   : > { %s1936_s26 = scalar_lea.vmem %s1935_s9, 512  ;;  %p1937_p9 = scmp.lt.s32.totalorder %s2244_s1, %s1935_s9 }
  0x6b   : > { %p1932_p2 = pnand %p1930_p1, %p1918_p8  ;;  %p1938_p6 = scmp.lt.s32.totalorder %s1936_s26, %s1929_s22 }
  0x6d   : > { %p1933_p5 = pneg %p1932_p2  ;;  %p1939_p12 = por %p1938_p6, %p1937_p9 }
  0x6f   : > { %p1940_p3 = pnand %p1939_p12, %p1933_p5 }
  0x71   : > { %1943 = shalt.err (!%p1940_p3)
}
  0x72   : > { %s2458_s5 = smov 4   ;;  %s2459_s16 = smov 64  }
  0x73   : > { %1646 = dma.hbm_to_vmem [thread:$0]  (!%p2240_p7), %s2238_s13, 256, %s2244_s1, %s2246_s3, %s2459_s16, %s2459_s16, %s2458_s5  }
  0x74   : > { %p2460_p1 = scmp.ne.s32.totalorder %s2446_s24, 0 }
  0x75   : > { %s2273_s7 = sand.u32 (!%p2460_p1), 1, %s2012_s18   ;;  %p2461_p3 = scmp.ne.s32.totalorder (!%p2460_p1), %s2454_s29, 0 }
  0x76   : > { %413 = sbr.rel (%p2460_p1) target bundleno = 1474 (0x5c2), region = 64  ;;  %s1343_s9 = sshll.u32 (!%p2460_p1), %s2273_s7, 4 }
  0x77   : > { %s416_s15 = scalar_lea.sflag (!%p2460_p1), [#allocation3], %s2273_s7  ;;  %s2279_s27 = scalar_lea.vmem (!%p2460_p1), [#allocation2], %s1343_s9 }
  0x7b   : > { %1987 = dma.done.wait (%p2461_p3), %s416_s15, 256  }
  0x7c   : > { %1989 = vsyncadd (%p2461_p3), %s416_s15, 4294967040  ;;  %p2462_p4 = scmp.eq.s32.totalorder %s2114_s23, 0 }
  0x7e   : > { %1991 = dma.done.wait (%p2462_p4), [#allocation6], 2048   ;;  %p2463_p12 = pmov %p2462_p4 }
  0x7f   : > { %p2464_p6 = pmov %p2462_p4 }
  0x80   : > { %1993 = vsyncadd (%p2463_p12), [#allocation6], 4294965248 }
  0x81   : > { %1995 = dma.done.wait (%p2464_p6), [#allocation9], 2048   ;;  %p2465_p2 = pmov %p2462_p4 }
  0x83   : > { %1997 = vsyncadd (%p2465_p2), [#allocation9], 4294965248  ;;  %p2466_p7 = pmov %p2465_p2 }
  0x84   : > { %p2467_p8 = pmov %p2465_p2 }
  0x85   : > { %1999 = dma.done.wait (%p2466_p7), [#allocation12], 1024  }
  0x86   : > { %2001 = vsyncadd (%p2467_p8), [#allocation12], 4294966272  ;;  %v1704_v0 = vld [vmem:[#allocation5 + $0x38] sm:$0xff]   ;;  %v1705_v1 = vld [vmem:[#allocation5 + $0x30] sm:$0xff]   ;;  %s1411_s16 = sshll.u32 %s2114_s23, 8  ;;  %s477_s15 = scalar_lea.vmem [#allocation13], %s1343_s9 }
  0x87   : > { %1483 = vmatprep.subr.bf16.mxu0 %v1704_v0  ;;  %v1706_v2 = vld [vmem:[#allocation5 + $0x28] sm:$0xff]   ;;  %v1707_v3 = vld [vmem:[#allocation5 + $0x20] sm:$0xff]   ;;  %v1708_v5 = vld [vmem:[#allocation5 + $0x18] sm:$0xff]   ;;  %s2378_s24 = scalar_lea.hbm %s2434_s11, %s1411_s16  ;;  %s1197_s23 = scalar_lea.sflag [#allocation4], %s2273_s7 }
  0x88   : > { %1484 = vmatpush3.bf16.msra.mxu0 %v1704_v0  ;;  %v1712_v4 = vld [vmem:[%s2279_s27] sm:$0xff]   ;;  %v2298_v6 = vld [vmem:[#allocation7 + $0x38] sm:$0xff]   ;;  %v1710_v9 = vld [vmem:[#allocation5 + $0x8] sm:$0xff]   ;;  %p2468_p11 = scmp.ne.s32.totalorder %s2455_s25, 0  ;;  %s2030_s13 = smov [#allocation13]  }
  0x89   : > { %1485 = vmatprep.subr.bf16.mxu0 %v1705_v1  ;;  %1499 = vmatprep.mubr.bf16.mxu0 %v1712_v4  ;;  %v2300_v7 = vld [vmem:[#allocation7 + $0x30] sm:$0xff]   ;;  %v1711_v10 = vld [vmem:[#allocation5] sm:$0xff]   ;;  %v1713_v11 = vld [vmem:[%s2279_s27 + $0x8] sm:$0xff]   ;;  %s1210_s27 = sshll.u32 %s477_s15, 4  ;;  %s1948_s29 = sshll.u32 %s2030_s13, 4  ;;  %s2380_s27 = int_to_ptr.vmem [resolvable:$true] %s1210_s27  ;;  %s1949_s29 = int_to_ptr.vmem [resolvable:$false] %s1948_s29 }
  0x8a   : > { %1503 = vmatprep.subr.bf16.mxu1 %v2298_v6  ;;  %v1709_v8 = vld [vmem:[#allocation5 + $0x10] sm:$0xff]   ;;  %v2307_v12 = vld [vmem:[#allocation7 + $0x28] sm:$0xff]   ;;  %v2311_v13 = vld [vmem:[#allocation7 + $0x20] sm:$0xff]   ;;  %s1944_s9 = scalar_lea.vmem %s2380_s27, 256  ;;  %s1950_s14 = scalar_lea.vmem %s1949_s29, 512 }
  0x8b   : > { %1504 = vmatpush3.bf16.msra.mxu1 %v2298_v6  ;;  %v2315_v14 = vld [vmem:[#allocation7 + $0x18] sm:$0xff]   ;;  %v2317_v15 = vld [vmem:[#allocation7 + $0x10] sm:$0xff]   ;;  %v2322_v16 = vld [vmem:[#allocation7 + $0x8] sm:$0xff]   ;;  %p1945_p10 = scmp.ne.s32.totalorder %s2380_s27, %s1944_s9  ;;  %p1951_p5 = scmp.lt.s32.totalorder %s2380_s27, %s1949_s29 }
  0x8c   : > { %1486 = vmatpush3.bf16.msra.mxu0 %v1705_v1  ;;  %1505 = vmatprep.subr.bf16.mxu1 %v2300_v7  ;;  %v2326_v17 = vld [vmem:[#allocation7] sm:$0xff]   ;;  %v1722_v18 = vld [vmem:[#allocation8 + $0x38] sm:$0xff]   ;;  %v1723_v19 = vld [vmem:[#allocation8 + $0x30] sm:$0xff]   ;;  %p1952_p9 = scmp.lt.s32.totalorder %s1950_s14, %s1944_s9 }
  0x8d   : > { %1487 = vmatprep.subr.bf16.mxu0 %v1706_v2  ;;  %v1350_v21 = vld [vmem:[%s2425_s2] ss:$0 sm:$0xff]  ;;  %v1724_v35 = vld [vmem:[#allocation8 + $0x28] sm:$0xff]   ;;  %v1726_v37 = vld [vmem:[#allocation8 + $0x18] sm:$0xff]   ;;  %p1946_p0 = pnand %p1945_p10, %p2468_p11 }
  0x8e   : > { %v1725_v36 = vld [vmem:[#allocation8 + $0x20] sm:$0xff]   ;;  %v1727_v38 = vld [vmem:[#allocation8 + $0x10] sm:$0xff]   ;;  %v1728_v39 = vld [vmem:[#allocation8 + $0x8] sm:$0xff]   ;;  %p1953_p1 = por %p1952_p9, %p1951_p5 }
  0x8f   : > { %1506 = vmatpush3.bf16.msra.mxu1 %v2300_v7  ;;  %v1729_v40 = vld [vmem:[#allocation8] sm:$0xff]   ;;  %v1730_v41 = vld [vmem:[#allocation10 + $0x38] sm:$0xff]   ;;  %v1731_v42 = vld [vmem:[#allocation10 + $0x30] sm:$0xff]   ;;  %p1947_p13 = pneg %p1946_p0 }
  0x90   : > { %1488 = vmatpush3.bf16.msra.mxu0 %v1706_v2  ;;  %1507 = vmatprep.subr.bf16.mxu1 %v2307_v12  ;;  %v1732_v43 = vld [vmem:[#allocation10 + $0x28] sm:$0xff]   ;;  %v1733_v44 = vld [vmem:[#allocation10 + $0x20] sm:$0xff]   ;;  %v1734_v45 = vld [vmem:[#allocation10 + $0x18] sm:$0xff]  }
  0x91   : > { %1489 = vmatprep.subr.bf16.mxu0 %v1707_v3  ;;  %v2338_v47 = vld [vmem:[%s2427_s4] ss:$0 sm:$0xff]  ;;  %v1735_v61 = vld [vmem:[#allocation10 + $0x10] sm:$0xff]   ;;  %v1736_v62 = vld [vmem:[#allocation10 + $0x8] sm:$0xff]   ;;  %p1954_p3 = pnand %p1953_p1, %p1947_p13 }
  0x92   : > { %v1737_v63 = vld [vmem:[#allocation10] sm:$0xff]  }
  0x93   : > { %1508 = vmatpush3.bf16.msra.mxu1 %v2307_v12 }
  0x94   : > { %1490 = vmatpush3.bf16.msra.mxu0 %v1707_v3  ;;  %1509 = vmatprep.subr.bf16.mxu1 %v2311_v13  ;;  %v1370_v3 = vld [vmem:[%s2429_s6] ss:$0 sm:$0xff] }
  0x95   : > { %1491 = vmatprep.subr.bf16.mxu0 %v1708_v5 }
  0x97   : > { %1510 = vmatpush3.bf16.msra.mxu1 %v2311_v13 }
  0x98   : > { %1492 = vmatpush3.bf16.msra.mxu0 %v1708_v5  ;;  %1511 = vmatprep.subr.bf16.mxu1 %v2315_v14 }
  0x99   : > { %1493 = vmatprep.subr.bf16.mxu0 %v1709_v8 }
  0x9b   : > { %1512 = vmatpush3.bf16.msra.mxu1 %v2315_v14 }
  0x9c   : > { %1494 = vmatpush3.bf16.msra.mxu0 %v1709_v8  ;;  %1513 = vmatprep.subr.bf16.mxu1 %v2317_v15 }
  0x9d   : > { %1495 = vmatprep.subr.bf16.mxu0 %v1710_v9 }
  0x9f   : > { %1514 = vmatpush3.bf16.msra.mxu1 %v2317_v15 }
  0xa0   : > { %1496 = vmatpush3.bf16.msra.mxu0 %v1710_v9  ;;  %1515 = vmatprep.subr.bf16.mxu1 %v2322_v16 }
  0xa1   : > { %1497 = vmatprep.subr.bf16.mxu0 %v1711_v10 }
  0xa3   : > { %1516 = vmatpush3.bf16.msra.mxu1 %v2322_v16 }
  0xa4   : > { %1498 = vmatpush3.bf16.msra.mxu0 %v1711_v10  ;;  %1517 = vmatprep.subr.bf16.mxu1 %v2326_v17 }
  0xa5   : > { %1523 = vmatprep.subr.bf16.mxu0 %v1722_v18 }
  0xa7   : > { %1500 = vmatmul.mubr.bf16.vlgmr.msra.gmra.mxu0 %v1713_v11  ;;  %1518 = vmatpush3.bf16.msra.mxu1 %v2326_v17  ;;  %v1738_v11 = vld [vmem:[#allocation11 + $0x38] sm:$0xff]  }
  0xa8   : > { %1524 = vmatpush3.bf16.msra.mxu0 %v1722_v18  ;;  %1543 = vmatprep.subr.bf16.mxu1 %v1730_v41 }
  0xa9   : > { %1525 = vmatprep.subr.bf16.mxu0 %v1723_v19 }
  0xac   : > { %1526 = vmatpush3.bf16.msra.mxu0 %v1723_v19 }
  0xad   : > { %1527 = vmatprep.subr.bf16.mxu0 %v1724_v35 }
  0xb0   : > { %1528 = vmatpush3.bf16.msra.mxu0 %v1724_v35 }
  0xb1   : > { %1529 = vmatprep.subr.bf16.mxu0 %v1725_v36 }
  0xb4   : > { %1530 = vmatpush3.bf16.msra.mxu0 %v1725_v36 }
  0xb5   : > { %1531 = vmatprep.subr.bf16.mxu0 %v1726_v37 }
  0xb8   : > { %1532 = vmatpush3.bf16.msra.mxu0 %v1726_v37 }
  0xb9   : > { %1533 = vmatprep.subr.bf16.mxu0 %v1727_v38 }
  0xbc   : > { %1534 = vmatpush3.bf16.msra.mxu0 %v1727_v38 }
  0xbd   : > { %1535 = vmatprep.subr.bf16.mxu0 %v1728_v39 }
  0xc0   : > { %1536 = vmatpush3.bf16.msra.mxu0 %v1728_v39 }
  0xc1   : > { %1537 = vmatprep.subr.bf16.mxu0 %v1729_v40 }
  0xc4   : > { %1538 = vmatpush3.bf16.msra.mxu0 %v1729_v40 }
  0xc5   : > { %1563 = vmatprep.subr.bf16.mxu0 %v2298_v6 }
 0x167   : > { %v1501_v20 = vpop.f32.mrf.mxu0 }
 0x168   : > { %v611_v26 = vadd.f32 %v1501_v20, %v1350_v21 }
 0x169   : > { %v602_v22 = vpop.f32.mrf.mxu0 }
 0x16a   : > { %v603_v23 = vadd.f32 %v1350_v21, %v602_v22 }
 0x16b   : > { %v1502_v24 = vpop.f32.mrf.mxu0 }
 0x16c   : > { %v614_v25 = vadd.f32 %v1502_v24, %v1350_v21  ;;  %1746 = vtanh.f32 %v603_v23 }
 0x16d   : > { %v605_v27 = vpop.f32.mrf.mxu0 }
 0x16e   : > { %v606_v28 = vadd.f32 %v1350_v21, %v605_v27  ;;  %1748 = vtanh.f32 %v614_v25 }
 0x170   : > { %1750 = vtanh.f32 %v606_v28  ;;  %v1740_v28 = vld [vmem:[#allocation11 + $0x28] sm:$0xff]  }
 0x171   : > { %1752 = vtanh.f32 %v611_v26 }
 0x179   : > { %v1747_v29 = vpop.eup %1746 }
 0x17b   : > { %v1749_v30 = vpop.eup %1748 }
 0x17d   : > { %v1751_v31 = vpop.eup %1750 }
 0x17e   : > { %v1753_v32 = vpop.eup %1752  ;;  %v621_v33 = vpack.c.bf16 %v1751_v31, %v1747_v29  ;;  %v1741_v29 = vld [vmem:[#allocation11 + $0x20] sm:$0xff]   ;;  %v1743_v31 = vld [vmem:[#allocation11 + $0x10] sm:$0xff]  }
 0x17f   : > { %v622_v34 = vpack.c.bf16 %v1749_v30, %v1753_v32  ;;  %v1742_v30 = vld [vmem:[#allocation11 + $0x18] sm:$0xff]   ;;  %v1744_v32 = vld [vmem:[#allocation11 + $0x8] sm:$0xff]  }
 0x180   : > { %1519 = vmatprep.mubr.bf16.mxu1 %v621_v33  ;;  %v1745_v33 = vld [vmem:[#allocation11] sm:$0xff]  }
 0x181   : > { %1520 = vmatmul.mubr.bf16.vlgmr.msra.gmra.mxu1 %v622_v34 }
 0x182   : > { %1544 = vmatpush3.bf16.msra.mxu1 %v1730_v41 }
 0x183   : > { %1545 = vmatprep.subr.bf16.mxu1 %v1731_v42 }
 0x186   : > { %1546 = vmatpush3.bf16.msra.mxu1 %v1731_v42 }
 0x187   : > { %1547 = vmatprep.subr.bf16.mxu1 %v1732_v43 }
 0x18a   : > { %1548 = vmatpush3.bf16.msra.mxu1 %v1732_v43 }
 0x18b   : > { %1549 = vmatprep.subr.bf16.mxu1 %v1733_v44 }
 0x18e   : > { %1550 = vmatpush3.bf16.msra.mxu1 %v1733_v44 }
 0x18f   : > { %1551 = vmatprep.subr.bf16.mxu1 %v1734_v45 }
 0x192   : > { %1552 = vmatpush3.bf16.msra.mxu1 %v1734_v45 }
 0x193   : > { %1553 = vmatprep.subr.bf16.mxu1 %v1735_v61 }
 0x196   : > { %1554 = vmatpush3.bf16.msra.mxu1 %v1735_v61 }
 0x197   : > { %1555 = vmatprep.subr.bf16.mxu1 %v1736_v62 }
 0x19a   : > { %1556 = vmatpush3.bf16.msra.mxu1 %v1736_v62 }
 0x19b   : > { %1557 = vmatprep.subr.bf16.mxu1 %v1737_v63 }
 0x19e   : > { %1558 = vmatpush3.bf16.msra.mxu1 %v1737_v63 }
 0x19f   : > { %1583 = vmatprep.subr.bf16.mxu1 %v1738_v11 }
 0x241   : > { %v1521_v46 = vpop.f32.mrf.mxu1 }
 0x242   : > { %v737_v52 = vadd.f32 %v1521_v46, %v2338_v47 }
 0x243   : > { %v728_v48 = vpop.f32.mrf.mxu1 }
 0x244   : > { %v729_v49 = vadd.f32 %v2338_v47, %v728_v48 }
 0x245   : > { %v1522_v50 = vpop.f32.mrf.mxu1 }
 0x246   : > { %v740_v51 = vadd.f32 %v1522_v50, %v2338_v47  ;;  %1754 = vtanh.f32 %v729_v49  ;;  %v1388_v49 = vld [vmem:[%s2433_s10] ss:$0 sm:$0xff] }
 0x247   : > { %v731_v53 = vpop.f32.mrf.mxu1 }
 0x248   : > { %v732_v54 = vadd.f32 %v2338_v47, %v731_v53  ;;  %1756 = vtanh.f32 %v740_v51 }
 0x24a   : > { %1758 = vtanh.f32 %v732_v54 }
 0x24b   : > { %1760 = vtanh.f32 %v737_v52 }
 0x253   : > { %v1755_v55 = vpop.eup %1754 }
 0x255   : > { %v1757_v56 = vpop.eup %1756 }
 0x257   : > { %v1759_v57 = vpop.eup %1758 }
 0x258   : > { %v1761_v58 = vpop.eup %1760  ;;  %v747_v59 = vpack.c.bf16 %v1759_v57, %v1755_v55 }
 0x259   : > { %v748_v60 = vpack.c.bf16 %v1757_v56, %v1761_v58 }
 0x25a   : > { %1539 = vmatprep.mubr.bf16.mxu0 %v747_v59 }
 0x25b   : > { %1540 = vmatmul.mubr.bf16.vlgmr.msra.gmra.mxu0 %v748_v60 }
 0x25c   : > { %1564 = vmatpush3.bf16.msra.mxu0 %v2298_v6 }
 0x25d   : > { %1565 = vmatprep.subr.bf16.mxu0 %v2300_v7 }
 0x260   : > { %1566 = vmatpush3.bf16.msra.mxu0 %v2300_v7 }
 0x261   : > { %1567 = vmatprep.subr.bf16.mxu0 %v2307_v12 }
 0x264   : > { %1568 = vmatpush3.bf16.msra.mxu0 %v2307_v12  ;;  %v1739_v12 = vld [vmem:[#allocation11 + $0x30] sm:$0xff]  }
 0x265   : > { %1569 = vmatprep.subr.bf16.mxu0 %v2311_v13 }
 0x268   : > { %1570 = vmatpush3.bf16.msra.mxu0 %v2311_v13 }
 0x269   : > { %1571 = vmatprep.subr.bf16.mxu0 %v2315_v14 }
 0x26c   : > { %1572 = vmatpush3.bf16.msra.mxu0 %v2315_v14  ;;  %v1379_v14 = vld [vmem:[%s2431_s8] ss:$0 sm:$0xff] }
 0x26d   : > { %1573 = vmatprep.subr.bf16.mxu0 %v2317_v15 }
 0x270   : > { %1574 = vmatpush3.bf16.msra.mxu0 %v2317_v15 }
 0x271   : > { %1575 = vmatprep.subr.bf16.mxu0 %v2322_v16 }
 0x274   : > { %1576 = vmatpush3.bf16.msra.mxu0 %v2322_v16 }
 0x275   : > { %1577 = vmatprep.subr.bf16.mxu0 %v2326_v17 }
 0x278   : > { %1578 = vmatpush3.bf16.msra.mxu0 %v2326_v17 }
 0x31b   : > { %v1541_v0 = vpop.f32.mrf.mxu0 }
 0x31c   : > { %v863_v8 = vadd.f32 %v1541_v0, %v1370_v3 }
 0x31d   : > { %v854_v1 = vpop.f32.mrf.mxu0 }
 0x31e   : > { %v855_v6 = vadd.f32 %v1370_v3, %v854_v1 }
 0x31f   : > { %v1542_v2 = vpop.f32.mrf.mxu0 }
 0x320   : > { %v866_v4 = vadd.f32 %v1542_v2, %v1370_v3 }
 0x321   : > { %v857_v5 = vpop.f32.mrf.mxu0 }
 0x322   : > { %v858_v7 = vadd.f32 %v1370_v3, %v857_v5  ;;  %v887_v10 = vpack.c.bf16 %v866_v4, %v863_v8 }
 0x324   : > { %v886_v9 = vpack.c.bf16 %v858_v7, %v855_v6 }
 0x326   : > { %1559 = vmatprep.mubr.bf16.mxu1 %v886_v9 }
 0x327   : > { %1560 = vmatmul.mubr.bf16.vlgmr.msra.gmra.mxu1 %v887_v10 }
 0x328   : > { %1584 = vmatpush3.bf16.msra.mxu1 %v1738_v11 }
 0x329   : > { %1585 = vmatprep.subr.bf16.mxu1 %v1739_v12 }
 0x32c   : > { %1586 = vmatpush3.bf16.msra.mxu1 %v1739_v12 }
 0x32d   : > { %1587 = vmatprep.subr.bf16.mxu1 %v1740_v28 }
 0x330   : > { %1588 = vmatpush3.bf16.msra.mxu1 %v1740_v28 }
 0x331   : > { %1589 = vmatprep.subr.bf16.mxu1 %v1741_v29 }
 0x334   : > { %1590 = vmatpush3.bf16.msra.mxu1 %v1741_v29 }
 0x335   : > { %1591 = vmatprep.subr.bf16.mxu1 %v1742_v30 }
 0x338   : > { %1592 = vmatpush3.bf16.msra.mxu1 %v1742_v30 }
 0x339   : > { %1593 = vmatprep.subr.bf16.mxu1 %v1743_v31 }
 0x33c   : > { %1594 = vmatpush3.bf16.msra.mxu1 %v1743_v31 }
 0x33d   : > { %1595 = vmatprep.subr.bf16.mxu1 %v1744_v32 }
 0x340   : > { %1596 = vmatpush3.bf16.msra.mxu1 %v1744_v32 }
 0x341   : > { %1597 = vmatprep.subr.bf16.mxu1 %v1745_v33 }
 0x344   : > { %1598 = vmatpush3.bf16.msra.mxu1 %v1745_v33 }
 0x3e7   : > { %v1561_v13 = vpop.f32.mrf.mxu1 }
 0x3e8   : > { %v985_v19 = vadd.f32 %v1561_v13, %v1379_v14 }
 0x3e9   : > { %v976_v15 = vpop.f32.mrf.mxu1 }
 0x3ea   : > { %v977_v16 = vadd.f32 %v1379_v14, %v976_v15 }
 0x3eb   : > { %v1562_v17 = vpop.f32.mrf.mxu1 }
 0x3ec   : > { %v988_v18 = vadd.f32 %v1562_v17, %v1379_v14  ;;  %1762 = vtanh.f32 %v977_v16 }
 0x3ed   : > { %v979_v20 = vpop.f32.mrf.mxu1 }
 0x3ee   : > { %v980_v21 = vadd.f32 %v1379_v14, %v979_v20  ;;  %1764 = vtanh.f32 %v988_v18 }
 0x3f0   : > { %1766 = vtanh.f32 %v980_v21 }
 0x3f1   : > { %1768 = vtanh.f32 %v985_v19 }
 0x3f9   : > { %v1763_v22 = vpop.eup %1762 }
 0x3fb   : > { %v1765_v23 = vpop.eup %1764 }
 0x3fd   : > { %v1767_v24 = vpop.eup %1766 }
 0x3fe   : > { %v1769_v25 = vpop.eup %1768  ;;  %v995_v26 = vpack.c.bf16 %v1767_v24, %v1763_v22 }
 0x3ff   : > { %v996_v27 = vpack.c.bf16 %v1765_v23, %v1769_v25 }
 0x400   : > { %1579 = vmatprep.mubr.bf16.mxu0 %v995_v26 }
 0x401   : > { %1580 = vmatmul.mubr.bf16.vlgmr.msra.gmra.mxu0 %v996_v27 }
 0x4c1   : > { %v1581_v34 = vpop.f32.mrf.mxu0 }
 0x4c2   : > { %v1040_v39 = vadd.f32 %v1581_v34, %v2338_v47 }
 0x4c3   : > { %v1031_v35 = vpop.f32.mrf.mxu0 }
 0x4c4   : > { %v1032_v36 = vadd.f32 %v2338_v47, %v1031_v35 }
 0x4c5   : > { %v1582_v37 = vpop.f32.mrf.mxu0 }
 0x4c6   : > { %v1043_v38 = vadd.f32 %v1582_v37, %v2338_v47  ;;  %1770 = vtanh.f32 %v1032_v36 }
 0x4c7   : > { %v1034_v40 = vpop.f32.mrf.mxu0 }
 0x4c8   : > { %v1035_v41 = vadd.f32 %v2338_v47, %v1034_v40  ;;  %1772 = vtanh.f32 %v1043_v38 }
 0x4ca   : > { %1774 = vtanh.f32 %v1035_v41 }
 0x4cb   : > { %1776 = vtanh.f32 %v1040_v39 }
 0x4d3   : > { %v1771_v42 = vpop.eup %1770 }
 0x4d5   : > { %v1773_v43 = vpop.eup %1772 }
 0x4d7   : > { %v1775_v44 = vpop.eup %1774 }
 0x4d8   : > { %v1777_v45 = vpop.eup %1776  ;;  %v1050_v46 = vpack.c.bf16 %v1775_v44, %v1771_v42 }
 0x4d9   : > { %v1051_v48 = vpack.c.bf16 %v1773_v43, %v1777_v45 }
 0x4da   : > { %1599 = vmatprep.mubr.bf16.mxu1 %v1050_v46 }
 0x4db   : > { %1600 = vmatmul.mubr.bf16.vlgmr.msra.gmra.mxu1 %v1051_v48 }
 0x59b   : > { %v1601_v50 = vpop.f32.mrf.mxu1 }
 0x59c   : > { %v1166_v51 = vadd.f32 %v1601_v50, %v1388_v49 }
 0x59d   : > { %v1157_v47 = vpop.f32.mrf.mxu1 }
 0x59e   : > { %v1158_v52 = vadd.f32 %v1388_v49, %v1157_v47  ;;  %1778 = vtanh.f32 %v1166_v51 }
 0x59f   : > { %v1602_v53 = vpop.f32.mrf.mxu1 }
 0x5a0   : > { %v1169_v54 = vadd.f32 %v1602_v53, %v1388_v49 }
 0x5a1   : > { %v1160_v55 = vpop.f32.mrf.mxu1 }
 0x5a2   : > { %1780 = vtanh.f32 %v1169_v54  ;;  %v1161_v56 = vadd.f32 %v1388_v49, %v1160_v55 }
 0x5a3   : > { %1782 = vtanh.f32 %v1158_v52 }
 0x5a4   : > { %1784 = vtanh.f32 %v1161_v56 }
 0x5ab   : > { %v1779_v57 = vpop.eup %1778 }
 0x5af   : > { %v1781_v58 = vpop.eup %1780 }
 0x5b0   : > { %v1783_v59 = vpop.eup %1782  ;;  %v1420_v60 = vpack.c.bf16 %v1781_v58, %v1779_v57 }
 0x5b1   : > { %v1785_v61 = vpop.eup %1784 }
 0x5b2   : > { %v1415_v62 = vpack.c.bf16 %v1785_v61, %v1783_v59  ;;  %1422 = vst [vmem:[%s477_s15 + $0x8] sm:$0xff] %v1420_v60  }
 0x5b4   : > { %1416 = vst [vmem:[%s477_s15] sm:$0xff] %v1415_v62  }
 0x5b5   : > { %1957 = shalt.err (!%p1954_p3)
}
 0x5b6   : > { %s1958_s21 = scalar_lea.hbm %s2378_s24, 256  ;;  %s1962_s5 = scalar_lea.hbm %s2434_s11, 512 }
 0x5b7   : > { %p1959_p4 = scmp.ne.s32.totalorder %s2378_s24, %s1958_s21  ;;  %p1963_p2 = scmp.lt.s32.totalorder %s2378_s24, %s2434_s11 }
 0x5b8   : > { %p1964_p7 = scmp.lt.s32.totalorder %s1962_s5, %s1958_s21 }
 0x5b9   : > { %p1960_p12 = pnand %p1959_p4, %p2468_p11 }
 0x5ba   : > { %p1965_p8 = por %p1964_p7, %p1963_p2 }
 0x5bb   : > { %p1961_p6 = pneg %p1960_p12 }
 0x5bd   : > { %p1966_p10 = pnand %p1965_p8, %p1961_p6 }
 0x5bf   : > { %1969 = shalt.err (!%p1966_p10)
}
 0x5c0   : > { %s2031_s1 = smov 64   ;;  %s2032_s3 = smov 4  }
 0x5c1   : > { %1625 = dma.vmem_to_hbm [thread:$0]  (%p2468_p11), %s2380_s27, 256, %s2378_s24, %s1197_s23, %s2031_s1, %s2031_s1, %s2032_s3  }
 0x5c2 PF: > { %s1225_s9 = sand.u32 1, %s2008_s17   ;;  %p2469_p0 = scmp.ne.s32.totalorder %s2456_s12, 0 }
 0x5c3   : > { %p2470_p13 = scmp.ge.s32.totalorder %s2020_s20, 2  ;;  %s1226_s13 = scalar_lea.sflag [#allocation4], %s1225_s9 }
 0x5c5   : > { %p1648_p5 = pnand %p2470_p13, %p2469_p0 }
 0x5c7   : > { %p1649_p9 = pneg %p1648_p5 }
 0x5c9   : > { %2003 = dma.done.wait (%p1649_p9), %s1226_s13, 256  }
 0x5ca   : > { %2005 = vsyncadd (%p1649_p9), %s1226_s13, 4294967040  ;;  %p27_p1 = scmp.ge.s32.totalorder %s2204_s30, 4   ;;  %s2471_s17 = smov %s2012_s18 }
 0x5cb   : > { %s2472_s18 = smov %s2016_s19  ;;  %s2473_s19 = smov %s2216_s28 }
 0x5cc   : > { %s2474_s20 = smov %s2204_s30  ;;  %29 = sbr.rel (!%p27_p1) target bundleno = 14 (0xe), region = 129 }
 0x5d1   :  { %1231 = vsyncpa [#allocation3], 1 }
 0x5d2   :  { %1233 = vsyncpa [#allocation3 + $0x1], 1 }
 0x5d3   :  { %1234 = vsyncpa [#allocation6], 1 }
 0x5d4   :  { %1235 = vsyncpa [#allocation9], 1 }
 0x5d5   :  { %1236 = vsyncpa [#allocation12], 1 }
 0x5d6   :  { %1237 = vsyncpa [#allocation4], 1 }
 0x5d7   :  { %1239 = vsyncpa [#allocation4 + $0x1], 1 }

</bundles_post_ra>
